<compile_context>
chip_gen: v6e
topology: v6e:2x2x1
jax: 0.10.0
libtpu: 0.0.40
codegen_flags: <defaults>
</compile_context>

<pallas_src>
import jax
import jax.numpy as jnp
from jax.experimental import pallas as pl
from jax.experimental.pallas import tpu as pltpu

_LANE = 128
_SUB = 8
_SLAB = _SUB * _LANE              # one (8, 128) slab = 1024 elements
_MAX_SLABS_PER_TILE = 512         # (512, 8, 128) f32 = 2 MiB per input per step
_VMEM_LIMIT_BYTES = 32 * 1024 * 1024


def _make_kernel(n_slabs, tile_slabs, needs_range_mask):
    def block_partials(p, g, i, apply_range_mask):
        mask = g > 0.0
        if apply_range_mask:
            # Guard the ragged final grid block: OOB slab rows of the partial
            # tile hold unspecified data and must be excluded.
            slab_ids = jax.lax.broadcasted_iota(
                jnp.int32, (tile_slabs, _SUB, _LANE), 0)
            mask = jnp.logical_and(mask, (i * tile_slabs + slab_ids) < n_slabs)
        d = jnp.abs(p - g)
        sl1 = jnp.where(d < 1.0, 0.5 * d * d, d - 0.5)
        sl1 = jnp.where(mask, sl1, 0.0)
        # Reduce only the slab axis (pure VPU adds): partials stay vreg-shaped
        # (1, 8, 128); the single cross-lane reduce happens in the wrapper.
        loss_p = jnp.sum(sl1, axis=0, keepdims=True)
        cnt_p = jnp.sum(mask.astype(jnp.float32), axis=0, keepdims=True)
        return loss_p, cnt_p

    def kernel(pred_ref, gt_ref, loss_ref, cnt_ref):
        i = pl.program_id(0)
        # Upcast per block, in-register (bf16 inputs stream at half the bytes).
        p = pred_ref[...].astype(jnp.float32)
        g = gt_ref[...].astype(jnp.float32)

        if needs_range_mask:
            last = pl.num_programs(0) - 1

            # Steady state: no iota / range mask at all.
            @pl.when(i < last)
            def _():
                l, c = block_partials(p, g, i, False)
                loss_ref[...] = l
                cnt_ref[...] = c

            # Ragged final block only: pay for the slab-range mask here.
            @pl.when(i == last)
            def _():
                l, c = block_partials(p, g, i, True)
                loss_ref[...] = l
                cnt_ref[...] = c
        else:
            l, c = block_partials(p, g, i, False)
            loss_ref[...] = l
            cnt_ref[...] = c

    return kernel


@jax.jit
def reg_loss(pred, gt):
    """Pallas implementation of RegLoss.forward(pred, gt). Returns a scalar f32.

    Callers may pass f32 or bf16 inputs; bf16 halves HBM traffic (the upcast
    happens inside the kernel, per block).
    """
    assert pred.shape == gt.shape
    n = pred.size

    pred_flat = pred.reshape(-1)
    gt_flat = gt.reshape(-1)

    # Only needed when n is not a multiple of 1024 (see module comment).
    pad = (-n) % _SLAB
    if pad:
        pred_flat = jnp.pad(pred_flat, (0, pad))
        gt_flat = jnp.pad(gt_flat, (0, pad))

    n_slabs = (n + pad) // _SLAB
    pred3d = pred_flat.reshape(n_slabs, _SUB, _LANE)
    gt3d = gt_flat.reshape(n_slabs, _SUB, _LANE)

    # Prefer at least 2 blocks (so the "parallel" axis can shard across v7x's
    # 2 TensorCores), capped at 512 slabs (2 MiB f32 per input per step).
    tile_slabs = min(_MAX_SLABS_PER_TILE, max(1, pl.cdiv(n_slabs, 2)))
    num_blocks = pl.cdiv(n_slabs, tile_slabs)
    needs_range_mask = (n_slabs % tile_slabs) != 0

    kernel = _make_kernel(n_slabs, tile_slabs, needs_range_mask)

    in_spec = pl.BlockSpec((tile_slabs, _SUB, _LANE), lambda i: (i, 0, 0))
    part_spec = pl.BlockSpec((1, _SUB, _LANE), lambda i: (i, 0, 0))
    part_shape = jax.ShapeDtypeStruct((num_blocks, _SUB, _LANE), jnp.float32)

    # TODO(synk): if a v7x profile shows exposed DMA at step boundaries, sweep
    # pipeline_mode=pl.Buffered(3) on the two input BlockSpecs.
    loss_part, cnt_part = pl.pallas_call(
        kernel,
        out_shape=(part_shape, part_shape),
        grid_spec=pltpu.PrefetchScalarGridSpec(
            num_scalar_prefetch=0,
            grid=(num_blocks,),
            in_specs=[in_spec, in_spec],
            out_specs=[part_spec, part_spec],
        ),
        compiler_params=pltpu.CompilerParams(
            # Per-block independent partial outputs -> no carried state, safe
            # to shard the grid axis across cores (v7x megacore).
            dimension_semantics=("parallel",),
            vmem_limit_bytes=_VMEM_LIMIT_BYTES,
        ),
    )(pred3d, gt3d)

    # Tiny final combine (num_blocks * 1024 f32 each) + exact divide, in f32.
    loss_sum = jnp.sum(loss_part, dtype=jnp.float32)
    cnt = jnp.sum(cnt_part, dtype=jnp.float32)
    return loss_sum / (cnt + 0.0001)


def _reg_loss_ref(pred, gt):
    """Pure-JAX reference mirroring the PyTorch module."""
    pred = pred.astype(jnp.float32)
    gt = gt.astype(jnp.float32)
    mask = gt > 0.0
    d = jnp.abs(pred - gt)
    sl1 = jnp.where(d < 1.0, 0.5 * d * d, d - 0.5)
    loss_sum = jnp.sum(jnp.where(mask, sl1, 0.0))
    return loss_sum / (jnp.sum(mask.astype(jnp.float32)) + 0.0001)


if __name__ == "__main__":
    key = jax.random.PRNGKey(0)
    k1, k2, k3, k4 = jax.random.split(key, 4)

    # Primary small NCHW regression map (e.g. size/offset head).
    B, C, H, W = 2, 4, 16, 16
    pred = jax.random.normal(k1, (B, C, H, W), dtype=jnp.float32)
    gt_vals = jax.random.uniform(k2, (B, C, H, W), minval=-2.0, maxval=3.0)
    gt = jnp.where(gt_vals > 0.5, gt_vals, 0.0).astype(jnp.float32)

    out = jax.block_until_ready(reg_loss(pred, gt))
    ref = _reg_loss_ref(pred, gt)
    assert jnp.allclose(out, ref, rtol=1e-5, atol=1e-5), (out, ref)

    # Ragged shape: exercises the sub-slab tail and the ragged-last-block
    # slab-range mask path (n = 2738 -> 3 slabs, tile of 2 slabs).
    shape2 = (1, 2, 37, 37)
    pred2 = jax.random.normal(k3, shape2, dtype=jnp.float32)
    gt2_vals = jax.random.uniform(k4, shape2, minval=-2.0, maxval=3.0)
    gt2 = jnp.where(gt2_vals > 0.5, gt2_vals, 0.0).astype(jnp.float32)
    out2 = jax.block_until_ready(reg_loss(pred2, gt2))
    ref2 = _reg_loss_ref(pred2, gt2)
    assert jnp.allclose(out2, ref2, rtol=1e-5, atol=1e-5), (out2, ref2)

    # bf16 streaming contract: caller keeps inputs bf16, kernel upcasts per
    # block in-register (reference computed on the same bf16 values).
    pred_bf = pred.astype(jnp.bfloat16)
    gt_bf = gt.astype(jnp.bfloat16)
    out_bf = jax.block_until_ready(reg_loss(pred_bf, gt_bf))
    ref_bf = _reg_loss_ref(pred_bf, gt_bf)
    assert jnp.allclose(out_bf, ref_bf, rtol=1e-3, atol=1e-3), (out_bf, ref_bf)

    print("KERNEL_OK")
</pallas_src>

<mosaic_0001>
module attributes {stable_mosaic.version = 11 : i64} {
  func.func @kernel(%arg0: i32, %arg1: memref<1x8x128xf32, #tpu.memory_space<vmem>>, %arg2: memref<1x8x128xf32, #tpu.memory_space<vmem>>, %arg3: memref<1x8x128xf32, #tpu.memory_space<vmem>>, %arg4: memref<1x8x128xf32, #tpu.memory_space<vmem>>) attributes {dimension_semantics = [#tpu.dimension_semantics<parallel>], iteration_bounds = array<i64: 2>, scalar_prefetch = 0 : i64, scratch_operands = 0 : i64, tpu.core_type = #tpu.core_type<tc>, window_params = [{transform_indices = @transform_0, window_bounds = array<i64: 1, 8, 128>}, {transform_indices = @transform_1, window_bounds = array<i64: 1, 8, 128>}, {transform_indices = @transform_2, window_bounds = array<i64: 1, 8, 128>}, {transform_indices = @transform_3, window_bounds = array<i64: 1, 8, 128>}]} {
    %c0 = arith.constant 0 : index
    %c0_0 = arith.constant 0 : index
    %c0_1 = arith.constant 0 : index
    %0 = vector.load %arg1[%c0, %c0_0, %c0_1] : memref<1x8x128xf32, #tpu.memory_space<vmem>>, vector<1x8x128xf32>
    %c0_2 = arith.constant 0 : index
    %c0_3 = arith.constant 0 : index
    %c0_4 = arith.constant 0 : index
    %1 = vector.load %arg2[%c0_2, %c0_3, %c0_4] : memref<1x8x128xf32, #tpu.memory_space<vmem>>, vector<1x8x128xf32>
    %cst = arith.constant 0.000000e+00 : f32
    %2 = vector.broadcast %cst : f32 to vector<1x8x128xf32>
    %3 = arith.cmpf ogt, %1, %2 : vector<1x8x128xf32>
    %4 = arith.subf %0, %1 : vector<1x8x128xf32>
    %5 = math.absf %4 : vector<1x8x128xf32>
    %cst_5 = arith.constant 1.000000e+00 : f32
    %6 = vector.broadcast %cst_5 : f32 to vector<1x8x128xf32>
    %7 = arith.cmpf olt, %5, %6 : vector<1x8x128xf32>
    %cst_6 = arith.constant 5.000000e-01 : f32
    %8 = vector.broadcast %cst_6 : f32 to vector<1x8x128xf32>
    %9 = arith.mulf %8, %5 : vector<1x8x128xf32>
    %10 = arith.mulf %9, %5 : vector<1x8x128xf32>
    %cst_7 = arith.constant 5.000000e-01 : f32
    %11 = vector.broadcast %cst_7 : f32 to vector<1x8x128xf32>
    %12 = arith.subf %5, %11 : vector<1x8x128xf32>
    %13 = arith.select %7, %10, %12 : vector<1x8x128xi1>, vector<1x8x128xf32>
    %cst_8 = arith.constant 0.000000e+00 : f32
    %14 = vector.broadcast %cst_8 : f32 to vector<1x8x128xf32>
    %15 = arith.select %3, %13, %14 : vector<1x8x128xi1>, vector<1x8x128xf32>
    %cst_9 = arith.constant dense<0.000000e+00> : vector<8x128xf32>
    %16 = vector.multi_reduction <add>, %15, %cst_9 [0] : vector<1x8x128xf32> to vector<8x128xf32>
    %17 = vector.shape_cast %16 : vector<8x128xf32> to vector<1x8x128xf32>
    %18 = arith.extui %3 : vector<1x8x128xi1> to vector<1x8x128xi32>
    %19 = arith.sitofp %18 : vector<1x8x128xi32> to vector<1x8x128xf32>
    %cst_10 = arith.constant dense<0.000000e+00> : vector<8x128xf32>
    %20 = vector.multi_reduction <add>, %19, %cst_10 [0] : vector<1x8x128xf32> to vector<8x128xf32>
    %21 = vector.shape_cast %20 : vector<8x128xf32> to vector<1x8x128xf32>
    %c0_11 = arith.constant 0 : index
    %c0_12 = arith.constant 0 : index
    %c0_13 = arith.constant 0 : index
    %22 = vector.load %arg3[%c0_11, %c0_12, %c0_13] : memref<1x8x128xf32, #tpu.memory_space<vmem>>, vector<1x8x128xf32>
    tpu.vector_store %arg3[%c0_11, %c0_12, %c0_13], %17 {strides = array<i32>} : memref<1x8x128xf32, #tpu.memory_space<vmem>>, vector<1x8x128xf32>,
    %c0_14 = arith.constant 0 : index
    %c0_15 = arith.constant 0 : index
    %c0_16 = arith.constant 0 : index
    %23 = vector.load %arg4[%c0_14, %c0_15, %c0_16] : memref<1x8x128xf32, #tpu.memory_space<vmem>>, vector<1x8x128xf32>
    tpu.vector_store %arg4[%c0_14, %c0_15, %c0_16], %21 {strides = array<i32>} : memref<1x8x128xf32, #tpu.memory_space<vmem>>, vector<1x8x128xf32>,
    return
  }
  func.func @transform_0(%arg0: i32) -> (i32, i32, i32) {
    %c0_i32 = arith.constant 0 : i32
    %c0_i32_0 = arith.constant 0 : i32
    %c0_i32_1 = arith.constant 0 : i32
    return %arg0, %c0_i32, %c0_i32_0 : i32, i32, i32
  }
  func.func @transform_1(%arg0: i32) -> (i32, i32, i32) {
    %c0_i32 = arith.constant 0 : i32
    %c0_i32_0 = arith.constant 0 : i32
    %c0_i32_1 = arith.constant 0 : i32
    return %arg0, %c0_i32, %c0_i32_0 : i32, i32, i32
  }
  func.func @transform_2(%arg0: i32) -> (i32, i32, i32) {
    %c0_i32 = arith.constant 0 : i32
    %c0_i32_0 = arith.constant 0 : i32
    %c0_i32_1 = arith.constant 0 : i32
    return %arg0, %c0_i32, %c0_i32_0 : i32, i32, i32
  }
  func.func @transform_3(%arg0: i32) -> (i32, i32, i32) {
    %c0_i32 = arith.constant 0 : i32
    %c0_i32_0 = arith.constant 0 : i32
    %c0_i32_1 = arith.constant 0 : i32
    return %arg0, %c0_i32, %c0_i32_0 : i32, i32, i32
  }
}

</mosaic_0001>

<bundles_post_ra>
// kernel: reg_loss.1
= control target key start
LH: loop header
LB: loop body
LE: loop exit
PB: predicated region body
PF: predicated region fallthrough
CT: control target
= control target key end

     0   :  { %s358_s12 = smov 0   ;;  %s381_s0 = inlined_call_operand.vmem [shape: f32[2,8,128], index: 0, kind: input, shape index: {}]   ;;  %s382_s1 = inlined_call_operand.vmem [shape: f32[2,8,128], index: 1, kind: input, shape index: {}]   ;;  %s383_s2 = inlined_call_operand.vmem [shape: f32[2,8,128], index: 2, kind: output, shape index: {0}]   ;;  %s384_s3 = inlined_call_operand.vmem [shape: f32[2,8,128], index: 3, kind: output, shape index: {1}]  }
   0x1 LB: > { %s307_s13 = sadd.s32 4294967295, %s335_s12   ;;  %p311_p0 = scmp.ge.s32.totalorder %s335_s12, 1  ;;  %s335_s12 = sphi %s358_s12, %s14_s12  }
   0x2   : > { %p148_p1 = scmp.lt.s32.totalorder %s335_s12, 3 }
   0x4   : > { %p149_p2 = pnand %p311_p0, %p148_p1 }
   0x5   : > { %p178_p3 = scmp.lt.s32.totalorder (!%p149_p2), %s307_s13, 1 }
   0x6   : > { %152 = sbr.rel (%p149_p2) target bundleno = 27 (0x1b), region = 28 }
   0xb   : > { %s386_s13 = smov (!%p178_p3, %s307_s13), 1  ;;  %v337_v3 = vmov 0.0  }
   0xc   : > { %s312_s14 = sshll.u32 %s386_s13, 3 }
   0xd   : > { %s181_s17 = scalar_lea.vmem %s381_s0, %s312_s14  ;;  %s185_s20 = scalar_lea.vmem %s382_s1, %s312_s14 }
   0xe   : > { %v194_v0 = vld [vmem:[%s181_s17] sm:$0xff]  ;;  %s193_s23 = scalar_lea.vmem %s384_s3, %s312_s14  ;;  %s189_s26 = scalar_lea.vmem %s383_s2, %s312_s14 }
   0xf   : > { %v195_v1 = vld [vmem:[%s185_s20] sm:$0xff] }
  0x10   : > { %vm196_vm0 = vcmp.gt.f32.partialorder %v195_v1, 0.0  ;;  %v197_v2 = vsub.f32 %v194_v0, %v195_v1 }
  0x11   : > { %v317_v4 = vsel %vm196_vm0, 1.0, %v337_v3 }
  0x12   : > { %v198_v5 = vand.u32 2147483647, %v197_v2  ;;  %210 = vst [vmem:[%s193_s23] sm:$0xff] %v317_v4 }
  0x14   : > { %v200_v6 = vmul.f32 0.5, %v198_v5  ;;  %v316_v7 = vadd.f32 -0.5, %v198_v5  ;;  %vm199_vm1 = vcmp.lt.f32.partialorder %v198_v5, 1.0 }
  0x16   : > { %v201_v8 = vmul.f32 %v200_v6, %v198_v5 }
  0x18   : > { %v203_v9 = vsel %vm199_vm1, %v201_v8, %v316_v7 }
  0x19   : > { %v204_v10 = vsel %vm196_vm0, %v203_v9, 0.0 }
  0x1a   : > { %209 = vst [vmem:[%s189_s26] sm:$0xff] %v204_v10 }
  0x1b PF: > { %s14_s12 = sadd.s32 1, %s335_s12  }
  0x1c   : > { %p11_p4 = scmp.ge.s32.totalorder %s14_s12, 4  }
  0x1e   :  { %13 = sbr.rel (!%p11_p4) target bundleno = 1 (0x1), region = 73 }

</bundles_post_ra>
